<compile_context>
chip_gen: v7x
topology: tpu7x:2x2x1
jax: 0.10.0
libtpu: 0.0.40
codegen_flags: <defaults>
</compile_context>

<pallas_src>
import functools
import random

import numpy as np
import jax
import jax.numpy as jnp
from jax.experimental import pallas as pl
from jax.experimental.pallas import tpu as pltpu


def _cdiv(a, b):
    return -(-a // b)


# ---------------------------------------------------------------------------
# Chain structure (static, per chosen-id tuple) and fused step values (traced).
# ---------------------------------------------------------------------------
def _chain_structure(chosen_ids):
    prims = []
    for tid in chosen_ids:
        if tid == 0:
            prims.append("affine")
        elif tid == 1:
            prims += ["affine", "tanh"]
        elif tid == 2:
            prims.append("affine")
        else:
            raise ValueError(f"unknown transform id {tid}")
    tags = []
    for t in prims:
        if t == "affine" and tags and tags[-1] == "affine":
            continue                      # fuses into the previous affine
        tags.append(t)
    n_affine = sum(1 for t in tags if t == "affine")
    return tuple(tags), n_affine


def _compose_steps(chosen_ids, params):
    """Fused step values, always accumulated in f32 (matches _chain_structure)."""
    s0, b0, s1, b1 = [p.astype(jnp.float32) for p in params]
    C = s0.shape[0]
    steps = []

    def push_affine(s, b):
        if steps and steps[-1][0] == "affine":
            _, sa, ba = steps[-1]
            steps[-1] = ("affine", s * sa, s * ba + b)
        else:
            steps.append(("affine", s, b))

    for tid in chosen_ids:
        if tid == 0:
            push_affine(s0, b0)
        elif tid == 1:
            push_affine(s1, b1)
            steps.append(("tanh",))
        elif tid == 2:
            push_affine(jnp.full((C,), -1.0, jnp.float32),
                        jnp.zeros((C,), jnp.float32))
        else:
            raise ValueError(f"unknown transform id {tid}")
    return steps


# ---------------------------------------------------------------------------
# Kernel: straight-line (affine | tanh)* chain over one (TR, TL) tile.
# ---------------------------------------------------------------------------
def _build_chain_kernel(step_tags, n_affine, lane_params):
    def kernel(*refs):
        if n_affine > 0:
            x_ref, p_ref, o_ref = refs
        else:
            (x_ref, o_ref), p_ref = refs, None

        v = x_ref[...].astype(jnp.float32)       # f32 compute (mem-bound; VPU slack)
        pp = p_ref[...] if n_affine > 0 else None
        j = 0
        for tag in step_tags:                     # static Python unroll
            if tag == "affine":
                if lane_params:                   # params packed as (2*n_affine, TL)
                    s = pp[2 * j:2 * j + 1, :]
                    b = pp[2 * j + 1:2 * j + 2, :]
                else:                             # params packed as (TR, 2*n_affine)
                    s = pp[:, 2 * j:2 * j + 1]
                    b = pp[:, 2 * j + 1:2 * j + 2]
                j += 1
                v = v * s + b
            else:                                 # "tanh" -> EUP slot (free-ish)
                v = jnp.tanh(v)
        o_ref[...] = v.astype(o_ref.dtype)

    return kernel


# ---------------------------------------------------------------------------
# Per-generation block budget + tiling.
# ---------------------------------------------------------------------------
def _chip_tile_budget():
    try:
        info = pltpu.get_tpu_info()
        phys = int(getattr(info, "vmem_capacity_bytes", 64 << 20))
    except Exception:
        phys = 64 << 20                           # conservative (v7x per-TC)
    target = 4 << 20                              # ~4 MiB blocks (v6e/v7x sweet spot)
    limit = max(32 << 20, min(int(phys * 0.7), 48 << 20))
    return target, limit


def _choose_tiles(R, L, itemsize, target_bytes):
    """Bounded 2-D tiles: rows multiple of 8 (or full R), lanes multiple of 128
    (or full L).  Guarantees >=2 grid steps when the array is big enough so
    v7x's two TensorCores both get work."""
    row_q = 8 if R > 8 else R
    if row_q * L * itemsize <= target_bytes:
        TL = L
        max_rows = target_bytes // (L * itemsize)
        TR = min(R, max(row_q, (max_rows // row_q) * row_q))
    else:
        TR = row_q
        max_lanes = max(1, target_bytes // (row_q * itemsize))
        TL = min(L, max(128, (max_lanes // 128) * 128))

    gr, gl = _cdiv(R, TR), _cdiv(L, TL)
    if gr * gl == 1 and R * L * itemsize >= (2 << 20):
        if R >= 16:
            TR = max(8, (R // 16) * 8)
        elif L >= 256:
            TL = max(128, (L // 256) * 128)
        gr, gl = _cdiv(R, TR), _cdiv(L, TL)
    return TR, TL, gr, gl


# ---------------------------------------------------------------------------
# Per-chain jitted apply function (memoized on chain structure + shape/dtype).
# ---------------------------------------------------------------------------
def _make_chain_fn(chosen_ids, N, C, H, W, dtype):
    step_tags, n_affine = _chain_structure(chosen_ids)
    L0 = H * W
    itemsize = np.dtype(dtype).itemsize

    lane_params = (L0 % 128 != 0)
    if not lane_params:                   # rows = (batch, channel), lanes = spatial
        R, L = N * C, L0
        Lp = L
    else:                                 # collapse (C,H,W) into lane dim + pad
        R, L = N, C * L0
        Lp = _cdiv(L, 128) * 128

    target_bytes, vmem_limit = _chip_tile_budget()
    TR, TL, gr, gl = _choose_tiles(R, Lp, itemsize, target_bytes)

    kernel = _build_chain_kernel(step_tags, n_affine, lane_params)

    # TODO(synk): optionally sweep pipeline_mode=pl.Buffered(3) on the x spec for v7x.
    in_specs = [pl.BlockSpec((TR, TL), lambda i, j: (i, j))]
    if n_affine > 0:
        if lane_params:
            in_specs.append(pl.BlockSpec((2 * n_affine, TL), lambda i, j: (0, j)))
        else:
            in_specs.append(pl.BlockSpec((TR, 2 * n_affine), lambda i, j: (i, 0)))
    out_specs = pl.BlockSpec((TR, TL), lambda i, j: (i, j))

    pcall = pl.pallas_call(
        kernel,
        out_shape=jax.ShapeDtypeStruct((R, Lp), dtype),
        grid=(gr, gl),
        in_specs=in_specs,
        out_specs=out_specs,
        compiler_params=pltpu.CompilerParams(
            dimension_semantics=("parallel", "parallel"),
            vmem_limit_bytes=vmem_limit),
    )

    def fn(x, s0, b0, s1, b1):
        steps = _compose_steps(chosen_ids, (s0, b0, s1, b1))   # f32 fusion
        if lane_params:
            x2 = x.reshape(N, C * L0)
            if Lp != L:
                x2 = jnp.pad(x2, ((0, 0), (0, Lp - L)))
            rows = []
            for tag, *sb in steps:
                if tag == "affine":
                    s, b = sb
                    s_row = jnp.repeat(s, L0)
                    b_row = jnp.repeat(b, L0)
                    if Lp != L:
                        s_row = jnp.pad(s_row, (0, Lp - L), constant_values=1.0)
                        b_row = jnp.pad(b_row, (0, Lp - L))
                    rows += [s_row, b_row]
            packed = jnp.stack(rows, axis=0) if rows else None
        else:
            x2 = x.reshape(R, L)
            cols = []
            for tag, *sb in steps:
                if tag == "affine":
                    s, b = sb
                    cols += [jnp.tile(s, N), jnp.tile(b, N)]
            packed = jnp.stack(cols, axis=1) if cols else None

        args = (x2,) if packed is None else (x2, packed)
        out2 = pcall(*args)
        if lane_params and Lp != L:
            out2 = out2[:, :L]
        return out2.reshape(N, C, H, W)

    return jax.jit(fn)


@functools.lru_cache(maxsize=None)
def _get_chain_fn(chosen_ids, shape, dtype_name):
    N, C, H, W = shape
    return _make_chain_fn(chosen_ids, N, C, H, W, np.dtype(dtype_name))


def apply_transform_chain(x, chosen_ids, params):
    """Apply the statically-known transform chain to NCHW x (one dispatch)."""
    if len(chosen_ids) == 0:
        return x
    fn = _get_chain_fn(tuple(int(t) for t in chosen_ids),
                       tuple(int(d) for d in x.shape),
                       str(x.dtype))
    s0, b0, s1, b1 = params
    return fn(x, s0, b0, s1, b1)


# ---------------------------------------------------------------------------
# Module wrapper mirroring RandomChoice semantics.
# ---------------------------------------------------------------------------
class RandomChoicePallas:
    """Pallas port of RandomChoice: randomly pick k transforms (with
    replacement, optionally weighted) and apply them sequentially, with
    probability p of applying at all.  Each chosen chain runs in a single
    statically-specialized, memoized+jitted Pallas kernel."""

    def __init__(self, transform_ids, params, n_choices=1, weights=None,
                 p=1.0, seed=0):
        self.transform_ids = list(transform_ids)
        self.params = params            # (s0, b0, s1, b1) per-channel params
        self.n_choices = n_choices      # int or (min, max) half-open range
        self.weights = weights
        self.p = p
        self._rng = random.Random(seed)  # deterministic host-side sampling
        self.last_chosen = ()

    def __len__(self):
        return len(self.transform_ids)

    def __getitem__(self, i):
        return self.transform_ids[i]

    def forward(self, x):
        if self.p >= 1.0 or self._rng.random() <= self.p:
            return self.transform(x)
        self.last_chosen = ()
        return x

    def transform(self, x):
        if isinstance(self.n_choices, tuple):
            lo, hi = self.n_choices
            n_choices = self._rng.randrange(lo, hi)   # [min, max)
        else:
            n_choices = self.n_choices
        if n_choices == 0:
            self.last_chosen = ()
            return x
        chosen = tuple(self._rng.choices(self.transform_ids,
                                         weights=self.weights, k=n_choices))
        self.last_chosen = chosen
        return apply_transform_chain(x, chosen, self.params)

    __call__ = forward


def _reference_chain(x, chosen_ids, params):
    """Pure-JAX reference: apply the chosen transforms one by one (unfused)."""
    s0, b0, s1, b1 = params
    v = x.astype(jnp.float32)
    for tid in chosen_ids:
        if tid == 0:
            v = v * s0[None, :, None, None] + b0[None, :, None, None]
        elif tid == 1:
            v = jnp.tanh(v * s1[None, :, None, None] + b1[None, :, None, None])
        else:
            v = -v
    return v.astype(x.dtype)


if __name__ == "__main__":
    key = jax.random.PRNGKey(0)
    kx, k1, k2, k3, k4 = jax.random.split(key, 5)

    N, C, H, W = 2, 4, 16, 16
    x = jax.random.normal(kx, (N, C, H, W), dtype=jnp.float32)

    # Deterministic per-channel parameters for the two affine transforms.
    s0 = 1.0 + 0.1 * jax.random.normal(k1, (C,), dtype=jnp.float32)
    b0 = 0.1 * jax.random.normal(k2, (C,), dtype=jnp.float32)
    s1 = 1.0 + 0.1 * jax.random.normal(k3, (C,), dtype=jnp.float32)
    b1 = 0.1 * jax.random.normal(k4, (C,), dtype=jnp.float32)
    params = (s0, b0, s1, b1)

    module = RandomChoicePallas(
        transform_ids=[0, 1, 2],
        params=params,
        n_choices=(1, 4),                 # sample k in [1, 4)
        weights=[0.5, 0.3, 0.2],
        p=1.0,
        seed=0,
    )

    # Several calls: different chains exercise the per-chain cache; functional
    # semantics means x is never mutated.
    for _ in range(3):
        y = module(x)
        jax.block_until_ready(y)
        assert y.shape == x.shape and y.dtype == x.dtype
        y_ref = _reference_chain(x, module.last_chosen, params)
        err = float(jnp.max(jnp.abs(y.astype(jnp.float32)
                                    - y_ref.astype(jnp.float32))))
        assert err < 1e-4, f"chain {module.last_chosen}: max abs error {err}"

    print("KERNEL_OK")
</pallas_src>

<mosaic_0001>
module attributes {stable_mosaic.version = 11 : i64} {
  func.func @kernel(%arg0: i32, %arg1: i32, %arg2: memref<8x256xf32, #tpu.memory_space<vmem>>, %arg3: memref<8x4xf32, #tpu.memory_space<vmem>>, %arg4: memref<8x256xf32, #tpu.memory_space<vmem>>) attributes {dimension_semantics = [#tpu.dimension_semantics<parallel>, #tpu.dimension_semantics<parallel>], iteration_bounds = array<i64: 1, 1>, scalar_prefetch = 0 : i64, scratch_operands = 0 : i64, tpu.core_type = #tpu.core_type<tc>, window_params = [{transform_indices = @transform_0, window_bounds = array<i64: 8, 256>}, {transform_indices = @transform_1, window_bounds = array<i64: 8, 4>}, {transform_indices = @transform_2, window_bounds = array<i64: 8, 256>}]} {
    %c0 = arith.constant 0 : index
    %c0_0 = arith.constant 0 : index
    %0 = vector.load %arg2[%c0, %c0_0] : memref<8x256xf32, #tpu.memory_space<vmem>>, vector<8x256xf32>
    %c0_1 = arith.constant 0 : index
    %c0_2 = arith.constant 0 : index
    %1 = vector.load %arg3[%c0_1, %c0_2] : memref<8x4xf32, #tpu.memory_space<vmem>>, vector<8x4xf32>
    %2 = vector.extract_strided_slice %1 {offsets = [0, 0], sizes = [8, 1], strides = [1, 1]} : vector<8x4xf32> to vector<8x1xf32>
    %3 = vector.extract_strided_slice %1 {offsets = [0, 1], sizes = [8, 1], strides = [1, 1]} : vector<8x4xf32> to vector<8x1xf32>
    %4 = vector.broadcast %2 : vector<8x1xf32> to vector<8x256xf32>
    %5 = arith.mulf %0, %4 : vector<8x256xf32>
    %6 = vector.broadcast %3 : vector<8x1xf32> to vector<8x256xf32>
    %7 = arith.addf %5, %6 : vector<8x256xf32>
    %8 = math.tanh %7 : vector<8x256xf32>
    %9 = vector.extract_strided_slice %1 {offsets = [0, 2], sizes = [8, 1], strides = [1, 1]} : vector<8x4xf32> to vector<8x1xf32>
    %10 = vector.extract_strided_slice %1 {offsets = [0, 3], sizes = [8, 1], strides = [1, 1]} : vector<8x4xf32> to vector<8x1xf32>
    %11 = vector.broadcast %9 : vector<8x1xf32> to vector<8x256xf32>
    %12 = arith.mulf %8, %11 : vector<8x256xf32>
    %13 = vector.broadcast %10 : vector<8x1xf32> to vector<8x256xf32>
    %14 = arith.addf %12, %13 : vector<8x256xf32>
    %c0_3 = arith.constant 0 : index
    %c0_4 = arith.constant 0 : index
    %15 = vector.load %arg4[%c0_3, %c0_4] : memref<8x256xf32, #tpu.memory_space<vmem>>, vector<8x256xf32>
    tpu.vector_store %arg4[%c0_3, %c0_4], %14 {strides = array<i32>} : memref<8x256xf32, #tpu.memory_space<vmem>>, vector<8x256xf32>,
    return
  }
  func.func @transform_0(%arg0: i32, %arg1: i32) -> (i32, i32) {
    %c0_i32 = arith.constant 0 : i32
    return %arg0, %arg1 : i32, i32
  }
  func.func @transform_1(%arg0: i32, %arg1: i32) -> (i32, i32) {
    %c0_i32 = arith.constant 0 : i32
    %c0_i32_0 = arith.constant 0 : i32
    return %arg0, %c0_i32 : i32, i32
  }
  func.func @transform_2(%arg0: i32, %arg1: i32) -> (i32, i32) {
    %c0_i32 = arith.constant 0 : i32
    return %arg0, %arg1 : i32, i32
  }
}

</mosaic_0001>

<bundles_post_ra>
// kernel: tile.31
= control target key start
LH: loop header
LB: loop body
LE: loop exit
PB: predicated region body
PF: predicated region fallthrough
CT: control target
= control target key end

     0   :  { %s22_s0 = inlined_call_operand.vmem [shape: f32[4], index: 0, kind: input, shape index: {}]   ;;  %s23_s1 = inlined_call_operand.vmem [shape: f32[2,4], index: 1, kind: output, shape index: {}]  }
   0x1   :  { %v4_v0 = vld [vmem:[%s22_s0] ss:$0 sm:$0xff] }
   0x2   :  { %5 = vst [vmem:[%s23_s1] sm:$0x3] %v4_v0 }

// kernel: tile.1
= control target key start
LH: loop header
LB: loop body
LE: loop exit
PB: predicated region body
PF: predicated region fallthrough
CT: control target
= control target key end

     0   :  { %s34_s8 = smov 125   ;;  %vm7_vm0 = vcmask 7168   ;;  %s35_s11 = smov 126   ;;  %s61_s0 = inlined_call_operand.vmem [shape: f32[2,4], index: 0, kind: input, shape index: {}]   ;;  %s62_s1 = inlined_call_operand.vmem [shape: f32[8,1], index: 1, kind: output, shape index: {}]  }
   0x1   :  { %v4_v0 = vld [vmem:[%s61_s0] sm:$0x3]  ;;  %s33_s0 = smov 127  }
   0x2   :  { %5 = vst [vmem:[#allocation0] sm:$0x3] %v4_v0 }
   0x9   :  { %v9_v1 = vld [vmem:[#allocation0] sm:$0x3]  }
   0xa   :  { %v21_v2 = vld [vmem:[#allocation0] sm:$0x3]   ;;  %10 = vrot.lane.b32.xlu0 %v9_v1, %s33_s0 }
   0xb   :  { %22 = vrot.lane.b32.xlu1 %v21_v2, %s34_s8  ;;  %v6_v3 = vld [vmem:[#allocation0] sm:$0x3]  }
   0xc   :  { %v15_v4 = vld [vmem:[#allocation0] sm:$0x3]   ;;  %8 = vst.msk [vmem:[%s62_s1] ss:$4 sm:$0x3] %vm7_vm0, %v6_v3  }
   0xe   :  { %16 = vrot.lane.b32.xlu0 %v15_v4, %s35_s11 }
  0x7c   :  { %v11_v5 = vpop.permute.xlu0 %10  }
  0x7d   :  { %v23_v6 = vpop.permute.xlu1 %22   ;;  %27 = vst.msk [vmem:[%s62_s1 + $0x1] ss:$4 sm:$0x3] %vm7_vm0, %v11_v5  }
  0x7e   :  { %29 = vst.msk [vmem:[%s62_s1 + $0x3] ss:$4 sm:$0x3] %vm7_vm0, %v23_v6  }
  0x80   :  { %v17_v7 = vpop.permute.xlu0 %16  }
  0x81   :  { %28 = vst.msk [vmem:[%s62_s1 + $0x2] ss:$4 sm:$0x3] %vm7_vm0, %v17_v7  }

// kernel: fn.1
= control target key start
LH: loop header
LB: loop body
LE: loop exit
PB: predicated region body
PF: predicated region fallthrough
CT: control target
= control target key end

     0   :  { %v60_v0 = vmov 0   ;;  %v61_v2 = vmov 2   ;;  %v62_v3 = vmov 1   ;;  %v63_v4 = vmov 3   ;;  %s94_s1 = inlined_call_operand.vmem [shape: f32[8,4], index: 1, kind: input, shape index: {}]   ;;  %s95_s0 = inlined_call_operand.vmem [shape: f32[8,256], index: 0, kind: input, shape index: {}]   ;;  %s96_s2 = inlined_call_operand.vmem [shape: f32[8,256], index: 2, kind: output, shape index: {}]  }
   0x1   :  { %51 = vset.pattern.permute.xlu0 %v60_v0  ;;  %v13_v1 = vld [vmem:[%s94_s1] sm:$0xff]  ;;  %53 = vset.pattern.permute.xlu1 %v61_v2  ;;  %v12_v7 = vld [vmem:[%s95_s0 + $0x8] sm:$0xff] }
   0x2   :  { %16 = vperm.xlu0 %51, %v13_v1   ;;  %30 = vperm.xlu1 %53, %v13_v1   ;;  %v11_v6 = vld [vmem:[%s95_s0] sm:$0xff] }
   0x6   :  { %52 = vset.pattern.permute.xlu0 %v62_v3  ;;  %54 = vset.pattern.permute.xlu1 %v63_v4 }
   0x7   :  { %22 = vperm.xlu0 %52, %v13_v1   ;;  %36 = vperm.xlu1 %54, %v13_v1  }
   0xb   :  { %55 = vset.pattern.permute.xlu0 %v63_v4 }
  0x81   :  { %v17_v5 = vpop.permute.xlu0 %16  ;;  %v31_v13 = vpop.permute.xlu1 %30 }
  0x82   :  { %v19_v8 = vmul.f32 %v17_v5, %v11_v6  ;;  %v20_v9 = vmul.f32 %v17_v5, %v12_v7 }
  0x86   :  { %v23_v10 = vpop.permute.xlu0 %22  ;;  %v37_v15 = vpop.permute.xlu1 %36 }
  0x87   :  { %v25_v11 = vadd.f32 %v23_v10, %v19_v8  ;;  %v26_v12 = vadd.f32 %v23_v10, %v20_v9 }
  0x89   :  { %56 = vtanh.f32 %v25_v11 }
  0x8a   :  { %58 = vtanh.f32 %v26_v12 }
  0x93   :  { %v57_v14 = vpop.eup %56 }
  0x94   :  { %v59_v16 = vpop.eup %58  ;;  %v33_v17 = vmul.f32 %v57_v14, %v31_v13 }
  0x95   :  { %v34_v18 = vmul.f32 %v59_v16, %v31_v13 }
  0x96   :  { %v39_v19 = vadd.f32 %v37_v15, %v33_v17 }
  0x97   :  { %v40_v20 = vadd.f32 %v37_v15, %v34_v18 }
  0x98   :  { %41 = vst [vmem:[%s96_s2] sm:$0xff] %v39_v19 }
  0x99   :  { %42 = vst [vmem:[%s96_s2 + $0x8] sm:$0xff] %v40_v20 }

</bundles_post_ra>
